<compile_context>
chip_gen: v5e
topology: v5e:2x2
jax: 0.10.0
libtpu: 0.0.40
codegen_flags: <defaults>
</compile_context>

<pallas_src>
import jax
import jax.numpy as jnp
from jax.experimental import pallas as pl
from jax.experimental.pallas import tpu as pltpu

HIDDEN = 25          # PyTorch module's fixed hidden width
HIDDEN_PAD = 128     # lane-dense padded hidden width


def _round_up(x, m):
    return (x + m - 1) // m * m


def _cdiv(a, b):
    return (a + b - 1) // b


def _pick_vmem_limit():
    """Generation-aware scoped-VMEM limit (96 MiB on v5e/v6e, 48 MiB on v7x)."""
    try:
        cap = pltpu.get_tpu_info().vmem_capacity_bytes
    except Exception:
        cap = 64 << 20
    return int(min(cap * 3 // 4, 96 << 20))


def probing_kernel(x_ref, w1_ref, b1_ref, w2_ref, b2_ref, out_ref):
    """Fused: out = relu(x @ w1 + b1) @ w2 + b2.

    x_ref:   [TB, Da+Db]   row tile of concat(X_a, X_b)
    w1_ref:  [Da+Db, Hp]   fused first-layer weight (transposed, hidden-padded)
    b1_ref:  [1, Hp]       first-layer bias (hidden-padded with zeros)
    w2_ref:  [Hp, O]       second-layer weight (transposed, zero rows in padding)
    b2_ref:  [1, O]        second-layer bias
    out_ref: [TB, O]       output tile
    """
    h = (jnp.dot(x_ref[...], w1_ref[...], preferred_element_type=jnp.float32)
         + b1_ref[...])
    h = jnp.maximum(h, 0.0)                                   # ReLU
    out_ref[...] = (jnp.dot(h, w2_ref[...], preferred_element_type=jnp.float32)
                    + b2_ref[...]).astype(out_ref.dtype)


def probing_model_bifurcation(x_a, x_b, params, *, block_rows=8192):
    """x_a: [..., Da], x_b: [..., Db] -> [..., output_dim] float32."""
    w1 = params["w1"]       # [Da+Db, Hp]
    b1 = params["b1"]       # [1, Hp]
    w2 = params["w2"]       # [Hp, O]
    b2 = params["b2"]       # [1, O]

    d_total, hp = w1.shape
    o = w2.shape[1]

    da = x_a.shape[-1]
    db = x_b.shape[-1]
    assert da + db == d_total

    lead = x_a.shape[:-1]
    n = 1
    for d in lead:
        n *= d

    # Fold torch.cat into one cheap wrapper-side concat so the kernel issues a
    # single layer-1 matmul instead of two tiny-K MXU pushes.
    x = jnp.concatenate(
        [x_a.reshape(n, da).astype(jnp.float32),
         x_b.reshape(n, db).astype(jnp.float32)],
        axis=-1)                                              # [N, Da+Db]

    # Row tile: large enough that per-grid-step overhead (~0.35 us) is noise,
    # small enough for every generation's VMEM (8192 rows ~ 28 MiB on v7x),
    # and split so the grid has >= 2 steps when possible (v7x has 2 TCs).
    tb = min(block_rows, max(_round_up(_cdiv(n, 2), 8), 8))
    grid = (_cdiv(n, tb),)
    # Ragged last block is fine: OOB input rows produce garbage only in output
    # rows that don't exist / are dropped (no cross-row reduction), and OOB
    # output writes are masked by Pallas.

    out = pl.pallas_call(
        probing_kernel,
        out_shape=jax.ShapeDtypeStruct((n, o), jnp.float32),
        grid_spec=pltpu.PrefetchScalarGridSpec(
            num_scalar_prefetch=0,
            grid=grid,
            in_specs=[
                pl.BlockSpec((tb, d_total), lambda i: (i, 0)),   # [X_a|X_b] row tile
                pl.BlockSpec((d_total, hp), lambda i: (0, 0)),   # fused W1 (resident)
                pl.BlockSpec((1, hp), lambda i: (0, 0)),         # b1
                pl.BlockSpec((hp, o), lambda i: (0, 0)),         # W2 (resident)
                pl.BlockSpec((1, o), lambda i: (0, 0)),          # b2
            ],
            out_specs=pl.BlockSpec((tb, o), lambda i: (i, 0)),
        ),
        compiler_params=pltpu.CompilerParams(
            dimension_semantics=("parallel",),
            vmem_limit_bytes=_pick_vmem_limit()),
    )(x, w1, b1, w2, b2)

    return out.reshape(*lead, o)


def init_torch_like_params(key, input_dim_a, input_dim_b, output_dim):
    """Deterministic synthetic params matching the PyTorch module's shapes."""
    ks = jax.random.split(key, 4)
    fan1 = input_dim_a + input_dim_b
    s1 = 1.0 / jnp.sqrt(jnp.float32(fan1))
    s2 = 1.0 / jnp.sqrt(jnp.float32(HIDDEN))
    w1 = jax.random.uniform(ks[0], (HIDDEN, fan1), jnp.float32, -s1, s1)        # [25, Da+Db]
    b1 = jax.random.uniform(ks[1], (HIDDEN,), jnp.float32, -s1, s1)             # [25]
    w2 = jax.random.uniform(ks[2], (output_dim, HIDDEN), jnp.float32, -s2, s2)  # [O, 25]
    b2 = jax.random.uniform(ks[3], (output_dim,), jnp.float32, -s2, s2)         # [O]
    return {"w1": w1, "b1": b1, "w2": w2, "b2": b2}


def prepare_pallas_params(tp):
    """Transpose + lane-pad the PyTorch-layout weights for the fused kernel."""
    w1, b1, w2, b2 = tp["w1"], tp["b1"], tp["w2"], tp["b2"]
    pad_h = HIDDEN_PAD - HIDDEN

    w1p = jnp.pad(w1.T, ((0, 0), (0, pad_h)))             # [Da+Db, 128]
    b1p = jnp.pad(b1, (0, pad_h))[None, :]                # [1, 128]
    w2p = jnp.pad(w2.T, ((0, pad_h), (0, 0)))             # [128, O], padded rows = 0
    b2p = b2[None, :]                                     # [1, O]
    return {"w1": w1p, "b1": b1p, "w2": w2p, "b2": b2p}


def reference_forward(x_a, x_b, tp):
    """Pure-JAX reference mirroring the PyTorch forward."""
    x = jnp.concatenate([x_a, x_b], axis=-1)
    h = jnp.maximum(x @ tp["w1"].T + tp["b1"], 0.0)
    return h @ tp["w2"].T + tp["b2"]


if __name__ == "__main__":
    key = jax.random.PRNGKey(0)
    k_a, k_b, k_p = jax.random.split(key, 3)

    batch = 8
    input_dim_a, input_dim_b, output_dim = 16, 12, 8

    x_a = jax.random.normal(k_a, (batch, input_dim_a), jnp.float32)
    x_b = jax.random.normal(k_b, (batch, input_dim_b), jnp.float32)

    torch_params = init_torch_like_params(k_p, input_dim_a, input_dim_b, output_dim)
    pallas_params = prepare_pallas_params(torch_params)

    out = jax.jit(probing_model_bifurcation)(x_a, x_b, pallas_params)
    out = jax.block_until_ready(out)

    assert out.shape == (batch, output_dim), out.shape
    assert jnp.all(jnp.isfinite(out))

    ref = reference_forward(x_a, x_b, torch_params)
    assert jnp.allclose(out, ref, atol=1e-5, rtol=1e-5), (
        float(jnp.max(jnp.abs(out - ref))))

    print("KERNEL_OK")
</pallas_src>

<mosaic_0001>
module attributes {stable_mosaic.version = 11 : i64} {
  func.func @probing_kernel(%arg0: i32, %arg1: memref<8x28xf32, #tpu.memory_space<vmem>>, %arg2: memref<28x128xf32, #tpu.memory_space<vmem>>, %arg3: memref<1x128xf32, #tpu.memory_space<vmem>>, %arg4: memref<128x8xf32, #tpu.memory_space<vmem>>, %arg5: memref<1x8xf32, #tpu.memory_space<vmem>>, %arg6: memref<8x8xf32, #tpu.memory_space<vmem>>) attributes {dimension_semantics = [#tpu.dimension_semantics<parallel>], iteration_bounds = array<i64: 1>, scalar_prefetch = 0 : i64, scratch_operands = 0 : i64, tpu.core_type = #tpu.core_type<tc>, window_params = [{transform_indices = @transform_0, window_bounds = array<i64: 8, 28>}, {pipeline_mode = #tpu.pipeline_mode<synchronous>, transform_indices = @transform_1, window_bounds = array<i64: 28, 128>}, {pipeline_mode = #tpu.pipeline_mode<synchronous>, transform_indices = @transform_2, window_bounds = array<i64: 1, 128>}, {pipeline_mode = #tpu.pipeline_mode<synchronous>, transform_indices = @transform_3, window_bounds = array<i64: 128, 8>}, {pipeline_mode = #tpu.pipeline_mode<synchronous>, transform_indices = @transform_4, window_bounds = array<i64: 1, 8>}, {transform_indices = @transform_5, window_bounds = array<i64: 8, 8>}]} {
    %c0 = arith.constant 0 : index
    %c0_0 = arith.constant 0 : index
    %0 = vector.load %arg1[%c0, %c0_0] : memref<8x28xf32, #tpu.memory_space<vmem>>, vector<8x28xf32>
    %c0_1 = arith.constant 0 : index
    %c0_2 = arith.constant 0 : index
    %1 = vector.load %arg2[%c0_1, %c0_2] : memref<28x128xf32, #tpu.memory_space<vmem>>, vector<28x128xf32>
    %cst = arith.constant dense<0.000000e+00> : vector<8x128xf32>
    %2 = tpu.matmul %0, %1, %cst {dimension_numbers = #tpu.dot_dimension_numbers<[1], [0], [0], [1], [0, 0, 1, 1], [], []>} : vector<8x28xf32>, vector<28x128xf32>, vector<8x128xf32> -> vector<8x128xf32>
    %c0_3 = arith.constant 0 : index
    %c0_4 = arith.constant 0 : index
    %3 = vector.load %arg3[%c0_3, %c0_4] : memref<1x128xf32, #tpu.memory_space<vmem>>, vector<1x128xf32>
    %4 = vector.broadcast %3 : vector<1x128xf32> to vector<8x128xf32>
    %5 = arith.addf %2, %4 : vector<8x128xf32>
    %cst_5 = arith.constant 0.000000e+00 : f32
    %6 = vector.broadcast %cst_5 : f32 to vector<8x128xf32>
    %7 = arith.maximumf %5, %6 : vector<8x128xf32>
    %c0_6 = arith.constant 0 : index
    %c0_7 = arith.constant 0 : index
    %8 = vector.load %arg4[%c0_6, %c0_7] : memref<128x8xf32, #tpu.memory_space<vmem>>, vector<128x8xf32>
    %cst_8 = arith.constant dense<0.000000e+00> : vector<8x8xf32>
    %9 = tpu.matmul %7, %8, %cst_8 {dimension_numbers = #tpu.dot_dimension_numbers<[1], [0], [0], [1], [0, 0, 1, 1], [], []>} : vector<8x128xf32>, vector<128x8xf32>, vector<8x8xf32> -> vector<8x8xf32>
    %c0_9 = arith.constant 0 : index
    %c0_10 = arith.constant 0 : index
    %10 = vector.load %arg5[%c0_9, %c0_10] : memref<1x8xf32, #tpu.memory_space<vmem>>, vector<1x8xf32>
    %11 = vector.broadcast %10 : vector<1x8xf32> to vector<8x8xf32>
    %12 = arith.addf %9, %11 : vector<8x8xf32>
    %c0_11 = arith.constant 0 : index
    %c0_12 = arith.constant 0 : index
    %13 = vector.load %arg6[%c0_11, %c0_12] : memref<8x8xf32, #tpu.memory_space<vmem>>, vector<8x8xf32>
    tpu.vector_store %arg6[%c0_11, %c0_12], %12 {strides = array<i32>} : memref<8x8xf32, #tpu.memory_space<vmem>>, vector<8x8xf32>,
    return
  }
  func.func @transform_0(%arg0: i32) -> (i32, i32) {
    %c0_i32 = arith.constant 0 : i32
    %c0_i32_0 = arith.constant 0 : i32
    return %arg0, %c0_i32 : i32, i32
  }
  func.func @transform_1(%arg0: i32) -> (i32, i32) {
    %c0_i32 = arith.constant 0 : i32
    %c0_i32_0 = arith.constant 0 : i32
    %c0_i32_1 = arith.constant 0 : i32
    return %c0_i32, %c0_i32_0 : i32, i32
  }
  func.func @transform_2(%arg0: i32) -> (i32, i32) {
    %c0_i32 = arith.constant 0 : i32
    %c0_i32_0 = arith.constant 0 : i32
    %c0_i32_1 = arith.constant 0 : i32
    return %c0_i32, %c0_i32_0 : i32, i32
  }
  func.func @transform_3(%arg0: i32) -> (i32, i32) {
    %c0_i32 = arith.constant 0 : i32
    %c0_i32_0 = arith.constant 0 : i32
    %c0_i32_1 = arith.constant 0 : i32
    return %c0_i32, %c0_i32_0 : i32, i32
  }
  func.func @transform_4(%arg0: i32) -> (i32, i32) {
    %c0_i32 = arith.constant 0 : i32
    %c0_i32_0 = arith.constant 0 : i32
    %c0_i32_1 = arith.constant 0 : i32
    return %c0_i32, %c0_i32_0 : i32, i32
  }
  func.func @transform_5(%arg0: i32) -> (i32, i32) {
    %c0_i32 = arith.constant 0 : i32
    %c0_i32_0 = arith.constant 0 : i32
    return %arg0, %c0_i32 : i32, i32
  }
}

</mosaic_0001>

<bundles_post_ra>
// kernel: probing_model_bifurcation.1
= control target key start
LH: loop header
LB: loop body
LE: loop exit
PB: predicated region body
PF: predicated region fallthrough
CT: control target
= control target key end

     0   :  { %vm34_vm0 = vcmask 1043456   ;;  %vm30_vm1 = vcmask 228352   ;;  %s251_s0 = inlined_call_operand.vmem [shape: f32[8,28], index: 0, kind: input, shape index: {}]   ;;  %s252_s1 = inlined_call_operand.vmem [shape: f32[28,128], index: 1, kind: input, shape index: {}]   ;;  %s253_s2 = inlined_call_operand.vmem [shape: f32[1,128], index: 2, kind: input, shape index: {}]   ;;  %s254_s3 = inlined_call_operand.vmem [shape: f32[128,8], index: 3, kind: input, shape index: {}]   ;;  %s255_s4 = inlined_call_operand.vmem [shape: f32[1,8], index: 4, kind: input, shape index: {}]   ;;  %s256_s5 = inlined_call_operand.hbm [shape: f32[8,8], index: 5, kind: output, shape index: {}]  }
   0x1   :  { %v25_v0 = vld [vmem:[%s252_s1 + $0x18] sm:$0xf]  ;;  %v24_v1 = vld [vmem:[%s252_s1 + $0x10] sm:$0xff]  ;;  %v23_v3 = vld [vmem:[%s252_s1 + $0x8] sm:$0xff] }
   0x2   :  { %117 = vmatpush.msk.msra.mxu0 %vm34_vm0, %v25_v0  ;;  %v74_v2 = vld [vmem:[%s254_s3 + $0x78] sm:$0xff]  ;;  %v73_v4 = vld [vmem:[%s254_s3 + $0x70] sm:$0xff]  ;;  %v72_v5 = vld [vmem:[%s254_s3 + $0x68] sm:$0xff] }
   0x3   :  { %79 = vmatpush.msra.mxu1 %v74_v2  ;;  %v22_v6 = vld [vmem:[%s252_s1] sm:$0xff]  ;;  %v70_v9 = vld [vmem:[%s254_s3 + $0x58] sm:$0xff] }
   0x4   :  { %51 = vmatpush.msra.mxu0 %v24_v1  ;;  %v21_v7 = vld [vmem:[%s251_s0] sm:$0xff] }
   0x5   :  { %80 = vmatpush.msra.mxu1 %v73_v4  ;;  %v71_v8 = vld [vmem:[%s254_s3 + $0x60] sm:$0xff] }
   0x6   :  { %52 = vmatpush.msra.mxu0 %v23_v3 }
   0x7   :  { %81 = vmatpush.msra.mxu1 %v72_v5 }
   0x8   :  { %53 = vmatpush.msra.mxu0 %v22_v6 }
   0x9   :  { %10 = vsyncpa [#allocation3], 0  ;;  %118 = vmatmul.msk.f32.vlgmr.msra.gmra.mxu0 %vm30_vm1, %v21_v7  ;;  %82 = vmatpush.msra.mxu1 %v71_v8  ;;  %v69_v10 = vld [vmem:[%s254_s3 + $0x50] sm:$0xff]  ;;  %v68_v11 = vld [vmem:[%s254_s3 + $0x48] sm:$0xff]  ;;  %s148_s12 = smov [#allocation2]   ;;  %s108_s14 = sshll.u32 %s256_s5, 4  ;;  %s109_s14 = int_to_ptr.hbm [resolvable:$true] %s108_s14 }
   0xa   :  { %v67_v12 = vld [vmem:[%s254_s3 + $0x40] sm:$0xff]  ;;  %v66_v13 = vld [vmem:[%s254_s3 + $0x38] sm:$0xff]  ;;  %v65_v14 = vld [vmem:[%s254_s3 + $0x30] sm:$0xff]  ;;  %s106_s1 = sshll.u32 %s148_s12, 4  ;;  %vm99_vm2 = vcmask 64512   ;;  %s107_s1 = int_to_ptr.vmem [resolvable:$true] %s106_s1 }
   0xb   :  { %83 = vmatpush.msra.mxu1 %v70_v9  ;;  %v64_v15 = vld [vmem:[%s254_s3 + $0x28] sm:$0xff]  ;;  %v63_v16 = vld [vmem:[%s254_s3 + $0x20] sm:$0xff]  ;;  %v62_v17 = vld [vmem:[%s254_s3 + $0x18] sm:$0xff] }
   0xc   :  { %v61_v18 = vld [vmem:[%s254_s3 + $0x10] sm:$0xff]  ;;  %v60_v19 = vld [vmem:[%s254_s3 + $0x8] sm:$0xff]  ;;  %v59_v20 = vld [vmem:[%s254_s3] sm:$0xff] }
   0xd   :  { %84 = vmatpush.msra.mxu1 %v69_v10  ;;  %v120_v21 = vld [vmem:[%s253_s2] ss:$0 sm:$0xff] }
   0xe   :  { %v121_v25 = vld [vmem:[%s255_s4] ss:$0 sm:$0xff] }
   0xf   :  { %85 = vmatpush.msra.mxu1 %v68_v11 }
  0x11   :  { %86 = vmatpush.msra.mxu1 %v67_v12 }
  0x13   :  { %87 = vmatpush.msra.mxu1 %v66_v13 }
  0x15   :  { %88 = vmatpush.msra.mxu1 %v65_v14 }
  0x17   :  { %89 = vmatpush.msra.mxu1 %v64_v15 }
  0x19   :  { %90 = vmatpush.msra.mxu1 %v63_v16 }
  0x1b   :  { %91 = vmatpush.msra.mxu1 %v62_v17 }
  0x1d   :  { %92 = vmatpush.msra.mxu1 %v61_v18 }
  0x1f   :  { %93 = vmatpush.msra.mxu1 %v60_v19 }
  0x21   :  { %94 = vmatpush.msra.mxu1 %v59_v20 }
  0x86   :  { %v55_v22 = vpop.f32.mrf.mxu0 }
  0x87   :  { %v56_v23 = vadd.f32 %v120_v21, %v55_v22 }
  0x89   :  { %v58_v24 = vmax.f32 %v56_v23, 0.0 }
  0x8b   :  { %95 = vmatmul.f32.vlgmr.msra.gmra.mxu1 %v58_v24 }
 0x108   :  { %v96_v26 = vpop.f32.mrf.mxu1 }
 0x109   :  { %v97_v27 = vadd.f32 %v121_v25, %v96_v26 }
 0x10b   :  { %100 = vst.msk [vmem:[#allocation2] sm:$0xff] %vm99_vm2, %v97_v27 }
 0x10c   :  { %111 = dma.vmem_to_hbm [thread:$0]  %s107_s1, 128, %s109_s14, [#allocation3]  }
 0x10d   :  { %146 = dma.done.wait [#allocation3], 128  }
 0x10e   :  { %147 = vsyncadd [#allocation3], 4294967168 }
 0x10f   :  { %116 = vsyncpa [#allocation3], 1 }

</bundles_post_ra>
